<compile_context>
chip_gen: v5e
topology: v5e:2x2
jax: 0.10.0
libtpu: 0.0.40
codegen_flags: <defaults>
</compile_context>

<pallas_src>
import functools

import jax
import jax.numpy as jnp
from jax.experimental import pallas as pl
from jax.experimental.pallas import tpu as pltpu

LANE = 128  # TPU vreg lane width


def gru_cell_kernel(x_ref, w_ref, b_ref, out_ref, *, hidden_size):
    """Single GRU step with h0 == 0.

    x_ref   : (B, I)        float32
    w_ref   : (I, 4*128)    [W_ir^T pad | W_iz^T pad | W_in^T pad | zeros]
    b_ref   : (1, 4*128)    [b_ir+b_hr  | b_iz+b_hz  | b_in       | b_hn ]
    out_ref : (B, H)

    All four gate blocks are 128-lane aligned, so every slice below is a
    zero-cost static view (no cross-lane movement). Padded lanes compute
    harmless values (sigmoid(0)=0.5, tanh(0)=0) and are sliced away at the end.
    """
    H = hidden_size
    x = x_ref[...]

    # One lane-dense MXU pass: (B, I) @ (I, 512) -> (B, 512), + fused bias row.
    gates = jnp.dot(x, w_ref[...], preferred_element_type=jnp.float32)
    gates = gates + b_ref[...]

    # r | z in one sigmoid over a contiguous, vreg-aligned 256-lane slice.
    rz = jax.nn.sigmoid(gates[:, 0:2 * LANE])
    r = rz[:, 0:LANE]
    z = rz[:, LANE:2 * LANE]

    # Block 3 of `gates` is exactly b_hn broadcast to (B, 128) (zero weights).
    n = jnp.tanh(gates[:, 2 * LANE:3 * LANE] + r * gates[:, 3 * LANE:4 * LANE])

    h = (1.0 - z) * n
    # Lane-offset-0 slice: masked store only, no rotation. Output is lane-sparse
    # (H=32 < 128); acceptable at this size.
    out_ref[...] = h[:, 0:H].astype(out_ref.dtype)


def prepare_gru_params(params):
    """One-time (per-parameter-set) packing: fuse/transpose/pad the weights so
    the per-call forward path does no layout work.

    Layout: 4 gate blocks of 128 lanes each:
      block 0: W_ir^T / (b_ir + b_hr)
      block 1: W_iz^T / (b_iz + b_hz)
      block 2: W_in^T /  b_in
      block 3: zeros  /  b_hn      (so gates[:, 384:384+H] == b_hn broadcast)
    """
    H, I = params["w_ir"].shape
    assert H <= LANE, "TODO(synk): round each gate block up to a multiple of 128 for H > 128"
    dt = params["w_ir"].dtype

    def pad_lanes(m):  # (rows, H) -> (rows, 128)
        return jnp.pad(m, ((0, 0), (0, LANE - H)))

    w_fused = jnp.concatenate(
        [pad_lanes(params["w_ir"].T),
         pad_lanes(params["w_iz"].T),
         pad_lanes(params["w_in"].T),
         jnp.zeros((I, LANE), dtype=dt)],
        axis=1)                                            # (I, 512)

    b_fused = jnp.concatenate(
        [pad_lanes((params["b_ir"] + params["b_hr"]).reshape(1, H)),
         pad_lanes((params["b_iz"] + params["b_hz"]).reshape(1, H)),
         pad_lanes(params["b_in"].reshape(1, H)),
         pad_lanes(params["b_hn"].reshape(1, H))],
        axis=1)                                            # (1, 512)

    return {"w_fused": w_fused, "b_fused": b_fused, "hidden_size": H}


def gru_layer_forward(x, fused):
    """x: (B, input_size) float32 -> (B, hidden_size) float32."""
    B = x.shape[0]
    H = fused["hidden_size"]

    kernel = functools.partial(gru_cell_kernel, hidden_size=H)

    # Tiny problem (<20 KiB working set): single grid point, every operand
    # resident in VMEM as a full block. No vmem_limit_bytes needed on any of
    # v5e / v6e / v7x.
    return pl.pallas_call(
        kernel,
        out_shape=jax.ShapeDtypeStruct((B, H), x.dtype),
        in_specs=[pl.BlockSpec(memory_space=pltpu.MemorySpace.VMEM)] * 3,
        out_specs=pl.BlockSpec(memory_space=pltpu.MemorySpace.VMEM),
    )(x, fused["w_fused"], fused["b_fused"])


def gru_layer_reference(x, params):
    """Pure-JAX reference implementing torch.nn.GRU single-step with h0 = 0."""
    B = x.shape[0]
    H = params["w_hr"].shape[0]
    h = jnp.zeros((B, H), dtype=x.dtype)
    r = jax.nn.sigmoid(x @ params["w_ir"].T + params["b_ir"]
                       + h @ params["w_hr"].T + params["b_hr"])
    z = jax.nn.sigmoid(x @ params["w_iz"].T + params["b_iz"]
                       + h @ params["w_hz"].T + params["b_hz"])
    n = jnp.tanh(x @ params["w_in"].T + params["b_in"]
                 + r * (h @ params["w_hn"].T + params["b_hn"]))
    return (1.0 - z) * n + z * h


def init_params(key, input_size, hidden_size):
    """Deterministic init matching nn.GRU param shapes (gate order [r, z, n]),
    stored split per gate."""
    k = 1.0 / jnp.sqrt(hidden_size)
    keys = jax.random.split(key, 12)
    u = lambda kk, shape: jax.random.uniform(kk, shape, jnp.float32, -k, k)
    return {
        "w_ir": u(keys[0], (hidden_size, input_size)),
        "w_iz": u(keys[1], (hidden_size, input_size)),
        "w_in": u(keys[2], (hidden_size, input_size)),
        "w_hr": u(keys[3], (hidden_size, hidden_size)),
        "w_hz": u(keys[4], (hidden_size, hidden_size)),
        "w_hn": u(keys[5], (hidden_size, hidden_size)),
        "b_ir": u(keys[6], (hidden_size,)),
        "b_iz": u(keys[7], (hidden_size,)),
        "b_in": u(keys[8], (hidden_size,)),
        "b_hr": u(keys[9], (hidden_size,)),
        "b_hz": u(keys[10], (hidden_size,)),
        "b_hn": u(keys[11], (hidden_size,)),
    }


if __name__ == "__main__":
    key = jax.random.PRNGKey(0)
    kx, kp = jax.random.split(key)

    B, INPUT_SIZE, HIDDEN_SIZE = 8, 16, 32
    x = jax.random.normal(kx, (B, INPUT_SIZE), dtype=jnp.float32)
    params = init_params(kp, INPUT_SIZE, HIDDEN_SIZE)

    # One-time weight packing (hoisted out of the per-call path).
    fused = prepare_gru_params(params)
    fused["w_fused"] = jax.block_until_ready(fused["w_fused"])
    fused["b_fused"] = jax.block_until_ready(fused["b_fused"])

    out = gru_layer_forward(x, fused)
    out = jax.block_until_ready(out)

    ref = gru_layer_reference(x, params)
    assert out.shape == (B, HIDDEN_SIZE)
    assert jnp.allclose(out, ref, atol=1e-5, rtol=1e-5), "mismatch vs reference"

    print("KERNEL_OK")
</pallas_src>

<mosaic_0001>
module attributes {stable_mosaic.version = 11 : i64} {
  func.func @gru_cell_kernel(%arg0: memref<8x16xf32, #tpu.memory_space<vmem>>, %arg1: memref<16x512xf32, #tpu.memory_space<vmem>>, %arg2: memref<1x512xf32, #tpu.memory_space<vmem>>, %arg3: memref<8x32xf32, #tpu.memory_space<vmem>>) attributes {dimension_semantics = [], scalar_prefetch = 0 : i64, scratch_operands = 0 : i64, tpu.core_type = #tpu.core_type<tc>} {
    %c0 = arith.constant 0 : index
    %c0_0 = arith.constant 0 : index
    %0 = vector.load %arg0[%c0, %c0_0] : memref<8x16xf32, #tpu.memory_space<vmem>>, vector<8x16xf32>
    %c0_1 = arith.constant 0 : index
    %c0_2 = arith.constant 0 : index
    %1 = vector.load %arg1[%c0_1, %c0_2] : memref<16x512xf32, #tpu.memory_space<vmem>>, vector<16x512xf32>
    %cst = arith.constant dense<0.000000e+00> : vector<8x512xf32>
    %2 = tpu.matmul %0, %1, %cst {dimension_numbers = #tpu.dot_dimension_numbers<[1], [0], [0], [1], [0, 0, 1, 1], [], []>} : vector<8x16xf32>, vector<16x512xf32>, vector<8x512xf32> -> vector<8x512xf32>
    %c0_3 = arith.constant 0 : index
    %c0_4 = arith.constant 0 : index
    %3 = vector.load %arg2[%c0_3, %c0_4] : memref<1x512xf32, #tpu.memory_space<vmem>>, vector<1x512xf32>
    %4 = vector.broadcast %3 : vector<1x512xf32> to vector<8x512xf32>
    %5 = arith.addf %2, %4 : vector<8x512xf32>
    %6 = vector.extract_strided_slice %5 {offsets = [0, 0], sizes = [8, 256], strides = [1, 1]} : vector<8x512xf32> to vector<8x256xf32>
    %7 = arith.negf %6 : vector<8x256xf32>
    %8 = math.exp %7 : vector<8x256xf32>
    %cst_5 = arith.constant 1.000000e+00 : f32
    %9 = vector.broadcast %cst_5 : f32 to vector<8x256xf32>
    %10 = arith.addf %9, %8 : vector<8x256xf32>
    %11 = arith.divf %9, %10 : vector<8x256xf32>
    %12 = vector.extract_strided_slice %11 {offsets = [0, 0], sizes = [8, 128], strides = [1, 1]} : vector<8x256xf32> to vector<8x128xf32>
    %13 = vector.extract_strided_slice %11 {offsets = [0, 128], sizes = [8, 128], strides = [1, 1]} : vector<8x256xf32> to vector<8x128xf32>
    %14 = vector.extract_strided_slice %5 {offsets = [0, 256], sizes = [8, 128], strides = [1, 1]} : vector<8x512xf32> to vector<8x128xf32>
    %15 = vector.extract_strided_slice %5 {offsets = [0, 384], sizes = [8, 128], strides = [1, 1]} : vector<8x512xf32> to vector<8x128xf32>
    %16 = arith.mulf %12, %15 : vector<8x128xf32>
    %17 = arith.addf %14, %16 : vector<8x128xf32>
    %18 = math.tanh %17 : vector<8x128xf32>
    %cst_6 = arith.constant 1.000000e+00 : f32
    %19 = vector.broadcast %cst_6 : f32 to vector<8x128xf32>
    %20 = arith.subf %19, %13 : vector<8x128xf32>
    %21 = arith.mulf %20, %18 : vector<8x128xf32>
    %22 = vector.extract_strided_slice %21 {offsets = [0, 0], sizes = [8, 32], strides = [1, 1]} : vector<8x128xf32> to vector<8x32xf32>
    %c0_7 = arith.constant 0 : index
    %c0_8 = arith.constant 0 : index
    %23 = vector.load %arg3[%c0_7, %c0_8] : memref<8x32xf32, #tpu.memory_space<vmem>>, vector<8x32xf32>
    tpu.vector_store %arg3[%c0_7, %c0_8], %22 {strides = array<i32>} : memref<8x32xf32, #tpu.memory_space<vmem>>, vector<8x32xf32>,
    return
  }
}

</mosaic_0001>

<bundles_post_ra>
// kernel: tpu_custom_call.1
= control target key start
LH: loop header
LB: loop body
LE: loop exit
PB: predicated region body
PF: predicated region fallthrough
CT: control target
= control target key end

     0   :  { %8 = vsyncpa [#allocation3], 0  ;;  %s386_s0 = inlined_call_operand.hbm [shape: f32[8,16], index: 0, kind: input, shape index: {}]   ;;  %s387_s1 = inlined_call_operand.hbm [shape: f32[16,512], index: 1, kind: input, shape index: {}]   ;;  %s388_s2 = inlined_call_operand.hbm [shape: f32[1,512], index: 2, kind: input, shape index: {}]   ;;  %s389_s3 = inlined_call_operand.hbm [shape: f32[8,32], index: 3, kind: output, shape index: {}]  }
   0x1   :  { %9 = vsyncpa [#allocation6], 0  ;;  %s26_s14 = sshll.u32 %s387_s1, 4  ;;  %s27_s14 = int_to_ptr.hbm [resolvable:$true] %s26_s14 }
   0x2   :  { %10 = vsyncpa [#allocation4], 0  ;;  %s348_s15 = smov [#allocation5]   ;;  %s16_s19 = sshll.u32 %s386_s0, 4  ;;  %s17_s19 = int_to_ptr.hbm [resolvable:$true] %s16_s19 }
   0x3   :  { %s28_s16 = sshll.u32 %s348_s15, 4  ;;  %s349_s20 = smov 512   ;;  %s29_s16 = int_to_ptr.vmem [resolvable:$true] %s28_s16 }
   0x4   :  { %s350_s21 = smov 32   ;;  %s351_s22 = smov [#allocation2]  }
   0x5   :  { %34 = dma.hbm_to_vmem [thread:$0]  %s27_s14, 1024, %s29_s16, [#allocation6], %s349_s20, %s349_s20, %s350_s21  }
   0x6   :  { %s18_s23 = sshll.u32 %s351_s22, 4  ;;  %s40_s26 = sshll.u32 %s388_s2, 4  ;;  %s19_s23 = int_to_ptr.vmem [resolvable:$true] %s18_s23  ;;  %s41_s26 = int_to_ptr.hbm [resolvable:$true] %s40_s26 }
   0x7   :  { %21 = dma.hbm_to_vmem [thread:$0]  %s17_s19, 128, %s19_s23, [#allocation3]  }
   0x8   :  { %s352_s1 = smov [#allocation7]  }
   0x9   :  { %s42_s27 = sshll.u32 %s352_s1, 4  ;;  %s43_s27 = int_to_ptr.vmem [resolvable:$true] %s42_s27 }
   0xa   :  { %45 = dma.hbm_to_vmem [thread:$0]  %s41_s26, 64, %s43_s27, [#allocation6]  }
   0xb   :  { %342 = dma.done.wait [#allocation3], 128  }
   0xc   :  { %343 = vsyncadd [#allocation3], 4294967168 }
   0xd   :  { %344 = dma.done.wait [#allocation6], 1088  }
   0xe   :  { %345 = vsyncadd [#allocation6], 4294966208  ;;  %v63_v0 = vld [vmem:[#allocation5 + $0x20] sm:$0xff]  ;;  %v64_v1 = vld [vmem:[#allocation5 + $0x28] sm:$0xff]  ;;  %vm77_vm0 = vcmask 130048   ;;  %s353_s0 = smov [#allocation8]  }
   0xf   :  { %v59_v2 = vld [vmem:[#allocation5] sm:$0xff]  ;;  %95 = vmatpush.msra.mxu0 %v63_v0  ;;  %115 = vmatpush.msra.mxu1 %v64_v1  ;;  %v60_v3 = vld [vmem:[#allocation5 + $0x8] sm:$0xff]  ;;  %v58_v4 = vld [vmem:[#allocation2] sm:$0xff]  ;;  %s211_s2 = sshll.u32 %s353_s0, 4  ;;  %s213_s30 = sshll.u32 %s389_s3, 4  ;;  %vm204_vm9 = vcmask 261120   ;;  %s212_s2 = int_to_ptr.vmem [resolvable:$true] %s211_s2  ;;  %s214_s30 = int_to_ptr.hbm [resolvable:$true] %s213_s30 }
  0x10   :  { %v66_v5 = vld [vmem:[#allocation5 + $0x38] sm:$0xff]  ;;  %v65_v6 = vld [vmem:[#allocation5 + $0x30] sm:$0xff]  ;;  %v67_v9 = vld [vmem:[#allocation7] sm:$0xf] }
  0x11   :  { %155 = vmatpush.msra.mxu3 %v66_v5  ;;  %v62_v7 = vld [vmem:[#allocation5 + $0x18] sm:$0xff]  ;;  %96 = vmatpush.msra.mxu0 %v59_v2  ;;  %v61_v8 = vld [vmem:[#allocation5 + $0x10] sm:$0xff]  ;;  %v69_v10 = vperm.slane %v67_v9, 0  ;;  %v70_v11 = vperm.slane %v67_v9, 1  ;;  %v72_v26 = vperm.slane %v67_v9, 3  ;;  %v71_v33 = vperm.slane %v67_v9, 2 }
  0x12   :  { %116 = vmatpush.msra.mxu1 %v60_v3  ;;  %224 = vmatmul.msk.f32.vlgmr.msra.gmra.mxu0 %vm77_vm0, %v58_v4 }
  0x13   :  { %225 = vmatmul.msk.f32.vlgmr.msra.gmra.mxu1 %vm77_vm0, %v58_v4  ;;  %135 = vmatpush.msra.mxu2 %v65_v6 }
  0x14   :  { %156 = vmatpush.msra.mxu3 %v62_v7 }
  0x15   :  { %227 = vmatmul.msk.f32.vlgmr.msra.gmra.mxu3 %vm77_vm0, %v58_v4  ;;  %136 = vmatpush.msra.mxu2 %v61_v8 }
  0x16   :  { %226 = vmatmul.msk.f32.vlgmr.msra.gmra.mxu2 %vm77_vm0, %v58_v4 }
  0x8f   :  { %v98_v12 = vpop.f32.mrf.mxu0 }
  0x90   :  { %v118_v13 = vpop.f32.mrf.mxu1  ;;  %v99_v14 = vadd.f32 %v98_v12, %v69_v10 }
  0x91   :  { %v119_v15 = vadd.f32 %v118_v13, %v70_v11 }
  0x92   :  { %v228_v16 = vmul.f32 -1.442695, %v99_v14 }
  0x93   :  { %v229_v17 = vmul.f32 -1.442695, %v119_v15 }
  0x94   :  { %236 = vpow2.f32 %v228_v16 }
  0x95   :  { %238 = vpow2.f32 %v229_v17 }
  0x98   :  { %v158_v29 = vpop.f32.mrf.mxu3 }
  0x99   :  { %v138_v35 = vpop.f32.mrf.mxu2  ;;  %v159_v36 = vadd.f32 %v158_v29, %v72_v26 }
  0x9a   :  { %v237_v18 = vpop.eup %236  ;;  %v139_v40 = vadd.f32 %v138_v35, %v71_v33 }
  0x9b   :  { %v239_v19 = vpop.eup %238  ;;  %v167_v20 = vadd.f32 1.0, %v237_v18 }
  0x9c   :  { %v168_v21 = vadd.f32 1.0, %v239_v19 }
  0x9d   :  { %240 = vrcp.f32 %v167_v20  ;;  %v180_v30 = vand.u32 2147483648, %v167_v20  ;;  %v178_v32 = vand.u32 2147483647, %v167_v20  ;;  %vm174_vm2 = vweird.f32 %v167_v20 }
  0x9e   :  { %242 = vrcp.f32 %v168_v21  ;;  %vm189_vm5 = vweird.f32 %v168_v21  ;;  %v195_v44 = vand.u32 2147483648, %v168_v21  ;;  %v193_v45 = vand.u32 2147483647, %v168_v21 }
  0x9f   :  { %v181_v38 = vor.u32 1.1754944e-38, %v180_v30  ;;  %vm179_vm4 = vcmp.eq.f32.partialorder %v178_v32, 8.507059e+37 }
  0xa0   :  { %v196_v48 = vor.u32 1.1754944e-38, %v195_v44  ;;  %vm194_vm8 = vcmp.eq.f32.partialorder %v193_v45, 8.507059e+37 }
  0xa3   :  { %v241_v22 = vpop.eup %240 }
  0xa4   :  { %v243_v23 = vpop.eup %242  ;;  %v170_v24 = vmul.f32 %v241_v22, %v167_v20  ;;  %vm175_vm1 = vweird.f32 %v241_v22 }
  0xa5   :  { %v185_v25 = vmul.f32 %v243_v23, %v168_v21  ;;  %vm176_vm3 = vmor %vm174_vm2, %vm175_vm1  ;;  %vm190_vm6 = vweird.f32 %v243_v23 }
  0xa6   :  { %v171_v27 = vsub.f32 1.0, %v170_v24  ;;  %vm191_vm7 = vmor %vm189_vm5, %vm190_vm6 }
  0xa7   :  { %v186_v28 = vsub.f32 1.0, %v185_v25 }
  0xa8   :  { %v172_v31 = vmul.f32 %v241_v22, %v171_v27 }
  0xa9   :  { %v187_v34 = vmul.f32 %v243_v23, %v186_v28 }
  0xaa   :  { %v173_v37 = vadd.f32 %v241_v22, %v172_v31 }
  0xab   :  { %v188_v42 = vadd.f32 %v243_v23, %v187_v34 }
  0xac   :  { %v177_v39 = vsel %vm176_vm3, %v241_v22, %v173_v37 }
  0xad   :  { %v182_v41 = vsel %vm179_vm4, %v181_v38, %v177_v39  ;;  %v192_v47 = vsel %vm191_vm7, %v243_v23, %v188_v42 }
  0xae   :  { %v199_v43 = vmul.f32 %v182_v41, %v159_v36  ;;  %v197_v49 = vsel %vm194_vm8, %v196_v48, %v192_v47 }
  0xaf   :  { %v202_v50 = vsub.f32 1.0, %v197_v49 }
  0xb0   :  { %v200_v46 = vadd.f32 %v199_v43, %v139_v40 }
  0xb2   :  { %244 = vtanh.f32 %v200_v46 }
  0xb8   :  { %v245_v51 = vpop.eup %244 }
  0xb9   :  { %v203_v52 = vmul.f32 %v245_v51, %v202_v50 }
  0xbb   :  { %205 = vst.msk [vmem:[#allocation8] sm:$0xff] %vm204_vm9, %v203_v52 }
  0xbc   :  { %216 = dma.vmem_to_hbm [thread:$0]  %s212_s2, 128, %s214_s30, [#allocation4]  }
  0xbd   :  { %346 = dma.done.wait [#allocation4], 128  }
  0xbe   :  { %347 = vsyncadd [#allocation4], 4294967168 }
  0xbf   :  { %221 = vsyncpa [#allocation3], 1 }
  0xc0   :  { %222 = vsyncpa [#allocation6], 1 }
  0xc1   :  { %223 = vsyncpa [#allocation4], 1 }

</bundles_post_ra>
